<compile_context>
chip_gen: v7x
topology: tpu7x:2x2x1
jax: 0.10.0
libtpu: 0.0.40
codegen_flags: <defaults>
</compile_context>

<pallas_src>
import functools
import math

import jax
import jax.numpy as jnp
import numpy as np
from jax import lax
from jax.experimental import pallas as pl
from jax.experimental.pallas import tpu as pltpu


def _round_up(x, m):
    return (x + m - 1) // m * m


def _round_down(x, m):
    return x // m * m


def _cdiv(a, b):
    return (a + b - 1) // b


# -----------------------------------------------------------------------------
# Kernel A: fused fc -> relu -> (dropout = identity) -> LayerNorm, plus the
# per-row feature sum used by the wrapper to derive the padding mask (avoids a
# second HBM read of `features`).
# -----------------------------------------------------------------------------
def _fc_ln_kernel(x_ref, w_ref, c_ref, out_ref, rsum_ref, *, inv_d, masked_channels):
    # c_ref rows: 0 = fc_b, 1 = ln_gamma, 2 = ln_beta, 3 = valid-channel mask
    x = x_ref[...]
    rsum_ref[...] = jnp.sum(x.astype(jnp.float32), axis=-1, keepdims=True)

    c = c_ref[...]
    h = jnp.dot(x, w_ref[...], preferred_element_type=jnp.float32) + c[0:1, :]
    h = jnp.maximum(h, 0.0)
    # TODO(synk): dropout applied as identity (eval mode); training-mode RNG dropout not implemented.

    # LayerNorm over the *real* d_model channels. Padded channels have h == 0
    # (zero weight cols / zero bias), so the mean sum is already correct; the
    # valid mask keeps them out of the variance (two-pass, no cancellation).
    mean = jnp.sum(h, axis=-1, keepdims=True) * inv_d
    centered = h - mean
    if masked_channels:
        centered = centered * c[3:4, :]
    var = jnp.sum(centered * centered, axis=-1, keepdims=True) * inv_d
    hn = centered * lax.rsqrt(var + 1e-5)
    out_ref[...] = (hn * c[1:2, :] + c[2:3, :]).astype(out_ref.dtype)


# -----------------------------------------------------------------------------
# Kernel B: DETR-style sine positional encoding via the single-phase trick:
#   pos[c] = sin(y * inv_den_y[c] + x * inv_den_x[c] + phase[c])
# (sin(a + pi/2) == cos(a) supplies the interleaved cosine channels).
# -----------------------------------------------------------------------------
def _pos_kernel(yx_ref, c_ref, pos_ref):
    # c_ref rows: 0 = inv_den_y, 1 = inv_den_x, 2 = phase
    c = c_ref[...]
    yx = yx_ref[...]
    angle = yx[:, 0:1] * c[0:1, :] + yx[:, 1:2] * c[1:2, :] + c[2:3, :]
    pos_ref[...] = jnp.sin(angle).astype(pos_ref.dtype)


def project_layer_forward(features, shape, params):
    bs, n_tok, d_in = features.shape
    last_w, last_h = shape
    assert n_tok == last_w * last_h

    x_dtype = features.dtype
    out_dtype = x_dtype                       # bf16 in -> bf16 out (half writeback)
    d_model = params["fc_w"].shape[1]
    npf = d_model // 2                        # num_pos_feats (sine/cosine halves)
    dmp = _round_up(d_model, 128)             # lane-dense output / MXU-friendly N

    # ---- padded parameters + per-channel constant tables ----
    w = (jnp.zeros((d_in, dmp), jnp.float32)
         .at[:, :d_model].set(params["fc_w"].astype(jnp.float32))
         .astype(x_dtype))                    # matmul operand dtype == activations

    def _pad_c(v):
        return jnp.zeros((dmp,), jnp.float32).at[:d_model].set(v.astype(jnp.float32))

    valid = jnp.zeros((dmp,), jnp.float32).at[:d_model].set(1.0)
    consts_fc = jnp.stack([_pad_c(params["fc_b"]), _pad_c(params["ln_g"]),
                           _pad_c(params["ln_b"]), valid])            # (4, dmp)

    k = jnp.arange(npf, dtype=jnp.float32)
    inv_den_half = 1.0 / jnp.power(10000.0, 2.0 * jnp.floor(k / 2.0) / npf)
    inv_den = jnp.concatenate([inv_den_half, inv_den_half])           # (d_model,)
    sel_y = jnp.concatenate([jnp.ones((npf,), jnp.float32),
                             jnp.zeros((npf,), jnp.float32)])
    is_cos = (jnp.arange(npf) % 2 == 1).astype(jnp.float32)           # odd -> cos
    phase = jnp.concatenate([is_cos, is_cos]) * (math.pi / 2.0)
    consts_pos = jnp.stack([_pad_c(inv_den * sel_y),
                            _pad_c(inv_den * (1.0 - sel_y)),
                            _pad_c(phase)])                           # (3, dmp)

    # ---- budget-derived row tile (tm) and VMEM limit ----
    rows = bs * n_tok
    rows8 = _round_up(rows, 8)
    x_bytes = jnp.dtype(x_dtype).itemsize
    o_bytes = jnp.dtype(out_dtype).itemsize
    try:
        vmem_cap = int(pltpu.get_tpu_info().vmem_capacity_bytes)
    except Exception:
        vmem_cap = 64 << 20                   # conservative default (v7x per-TC)
    target = max(24 << 20, min(int(vmem_cap * 0.70), 100 << 20))

    # Per-grid-step VMEM: double-buffered streamed x / out / rowsum tiles; the
    # weight & consts are counted double-buffered as the worst case even though
    # single buffering is requested below.
    per_row = 2 * d_in * x_bytes + 2 * dmp * o_bytes + 2 * 128 * 4
    fixed = 2 * d_in * dmp * x_bytes + 2 * 8 * dmp * 4 + (2 << 20)
    tm = max(8, min(2048, (target - fixed) // per_row, rows8))
    tm = max(8, _round_down(tm, 8))
    # Keep >= 2 grid steps so both v7x TensorCores get work (megacore).
    if rows8 > 8 and _cdiv(rows, tm) < 2:
        tm = _round_up(_cdiv(rows, 2), 8)
    rows_pad = _round_up(rows, tm)
    pad = rows_pad - rows
    grid = (rows_pad // tm,)

    vmem_limit = int(min(max(fixed + per_row * tm + (6 << 20), 24 << 20),
                         max(vmem_cap - (4 << 20), 24 << 20)))
    cparams = pltpu.CompilerParams(dimension_semantics=("parallel",),
                                   vmem_limit_bytes=vmem_limit)

    x_rows = features.reshape(rows, d_in)                # keep storage dtype
    if pad:
        x_rows = jnp.pad(x_rows, ((0, pad), (0, 0)))

    def _inv_kwargs(single_buffered):
        # Grid-invariant inputs: request single buffering (fallback if the
        # installed jax does not support pipeline_mode on BlockSpec).
        if single_buffered and hasattr(pl, "Buffered"):
            return {"pipeline_mode": pl.Buffered(1)}
        return {}

    # ---- kernel A: fc -> relu -> LN (+ per-row feature sum) ----
    def _call_fc_ln(single_buffered):
        kw = _inv_kwargs(single_buffered)
        return pl.pallas_call(
            functools.partial(_fc_ln_kernel, inv_d=1.0 / d_model,
                              masked_channels=(dmp != d_model)),
            out_shape=(jax.ShapeDtypeStruct((rows_pad, dmp), out_dtype),
                       jax.ShapeDtypeStruct((rows_pad, 1), jnp.float32)),
            grid_spec=pltpu.PrefetchScalarGridSpec(
                num_scalar_prefetch=0,
                grid=grid,
                in_specs=[pl.BlockSpec((tm, d_in), lambda i: (i, 0)),
                          pl.BlockSpec((d_in, dmp), lambda i: (0, 0), **kw),
                          pl.BlockSpec((4, dmp), lambda i: (0, 0), **kw)],
                out_specs=[pl.BlockSpec((tm, dmp), lambda i: (i, 0)),
                           pl.BlockSpec((tm, 1), lambda i: (i, 0))]),
            compiler_params=cparams,
        )(x_rows, w, consts_fc)

    try:
        out_rows, rsum_rows = _call_fc_ln(True)
        single_ok = True
    except Exception:
        out_rows, rsum_rows = _call_fc_ln(False)
        single_ok = False

    # ---- tiny XLA glue: mask + normalized cumsum grid embeds ----
    mask = (rsum_rows[:rows, 0] == 0.0).reshape(bs, n_tok)            # (bs, N) bool
    not_mask = (~mask).reshape(bs, last_w, last_h).astype(jnp.float32)
    y_embed = jnp.cumsum(not_mask, axis=1)
    x_embed = jnp.cumsum(not_mask, axis=2)
    eps = 1e-6
    scale = 2.0 * math.pi
    y_embed = y_embed / (y_embed[:, -1:, :] + eps) * scale
    x_embed = x_embed / (x_embed[:, :, -1:] + eps) * scale
    yx_rows = jnp.stack([y_embed.reshape(rows), x_embed.reshape(rows)],
                        axis=-1).astype(jnp.float32)                  # (rows, 2)
    if pad:
        yx_rows = jnp.pad(yx_rows, ((0, pad), (0, 0)))

    # ---- kernel B: positional encoding ----
    def _call_pos(single_buffered):
        kw = _inv_kwargs(single_buffered)
        return pl.pallas_call(
            _pos_kernel,
            out_shape=jax.ShapeDtypeStruct((rows_pad, dmp), out_dtype),
            grid_spec=pltpu.PrefetchScalarGridSpec(
                num_scalar_prefetch=0,
                grid=grid,
                in_specs=[pl.BlockSpec((tm, 2), lambda i: (i, 0)),
                          pl.BlockSpec((3, dmp), lambda i: (0, 0), **kw)],
                out_specs=pl.BlockSpec((tm, dmp), lambda i: (i, 0))),
            compiler_params=cparams,
        )(yx_rows, consts_pos)

    try:
        pos_rows = _call_pos(single_ok)
    except Exception:
        pos_rows = _call_pos(False)

    out = out_rows[:rows, :d_model].reshape(bs, n_tok, d_model)
    pos_grid = pos_rows[:rows, :d_model].reshape(bs, n_tok, d_model)
    mask_out = mask[:, None, None, :]                                 # (bs,1,1,N) bool
    return out, pos_grid, mask_out


def _reference(features, shape, params):
    """Pure-JAX mirror of the PyTorch forward (eval mode) for validation."""
    bs, n_tok, d_in = features.shape
    last_w, last_h = shape
    d_model = params["fc_w"].shape[1]
    npf = d_model // 2
    f32 = features.astype(jnp.float32)

    mask = jnp.sum(f32, -1) == 0
    not_mask = (~mask).reshape(bs, last_w, last_h).astype(jnp.float32)
    y_embed = jnp.cumsum(not_mask, axis=1)
    x_embed = jnp.cumsum(not_mask, axis=2)
    eps = 1e-6
    scale = 2.0 * math.pi
    y_embed = y_embed / (y_embed[:, -1:, :] + eps) * scale
    x_embed = x_embed / (x_embed[:, :, -1:] + eps) * scale

    dim_t = jnp.arange(npf, dtype=jnp.float32)
    dim_t = 10000.0 ** (2.0 * jnp.floor(dim_t / 2.0) / npf)
    pos_x = x_embed[..., None] / dim_t
    pos_y = y_embed[..., None] / dim_t
    pos_x = jnp.stack([jnp.sin(pos_x[..., 0::2]), jnp.cos(pos_x[..., 1::2])],
                      axis=-1).reshape(bs, last_w, last_h, npf)
    pos_y = jnp.stack([jnp.sin(pos_y[..., 0::2]), jnp.cos(pos_y[..., 1::2])],
                      axis=-1).reshape(bs, last_w, last_h, npf)
    pos = jnp.concatenate([pos_y, pos_x], axis=-1).reshape(bs, n_tok, d_model)

    h = jnp.maximum(f32 @ params["fc_w"] + params["fc_b"], 0.0)
    mean = h.mean(-1, keepdims=True)
    var = ((h - mean) ** 2).mean(-1, keepdims=True)
    out = (h - mean) / jnp.sqrt(var + 1e-5) * params["ln_g"] + params["ln_b"]
    return out, pos, mask[:, None, None, :]


if __name__ == "__main__":
    key = jax.random.PRNGKey(0)
    bs, last_w, last_h, d_in, d_model = 2, 4, 4, 64, 32
    n_tok = last_w * last_h

    k_feat, k_w, k_b = jax.random.split(key, 3)
    features = jax.random.normal(k_feat, (bs, n_tok, d_in), dtype=jnp.float32)
    features = features.at[:, -3:, :].set(0.0)          # exercise the mask path

    # deterministic parameter init (mirrors __init__: Linear + LayerNorm, xavier on dim>1)
    bound_w = math.sqrt(6.0 / (d_in + d_model))          # xavier_uniform
    fc_w = jax.random.uniform(k_w, (d_in, d_model), minval=-bound_w, maxval=bound_w,
                              dtype=jnp.float32)
    bound_b = 1.0 / math.sqrt(d_in)                      # nn.Linear default bias init
    fc_b = jax.random.uniform(k_b, (d_model,), minval=-bound_b, maxval=bound_b,
                              dtype=jnp.float32)
    params = dict(fc_w=fc_w, fc_b=fc_b,
                  ln_g=jnp.ones((d_model,), jnp.float32),
                  ln_b=jnp.zeros((d_model,), jnp.float32))

    ref_out, ref_pos, ref_mask = _reference(features, (last_w, last_h), params)

    # ---- f32 activations ----
    out, pos_grid, mask = project_layer_forward(features, (last_w, last_h), params)
    jax.block_until_ready((out, pos_grid, mask))
    # tolerance covers MXU-pass / XLA precision differences for f32 matmuls
    np.testing.assert_allclose(np.asarray(out.astype(jnp.float32)),
                               np.asarray(ref_out), rtol=3e-2, atol=3e-2)
    np.testing.assert_allclose(np.asarray(pos_grid.astype(jnp.float32)),
                               np.asarray(ref_pos), rtol=3e-2, atol=3e-2)
    assert bool(jnp.all(mask == ref_mask))
    assert out.shape == (bs, n_tok, d_model)
    assert pos_grid.shape == (bs, n_tok, d_model)
    assert mask.shape == (bs, 1, 1, n_tok)

    # ---- bf16 activations (native bf16 MXU operands + bf16 writeback) ----
    out_b, pos_b, mask_b = project_layer_forward(features.astype(jnp.bfloat16),
                                                 (last_w, last_h), params)
    jax.block_until_ready((out_b, pos_b, mask_b))
    np.testing.assert_allclose(np.asarray(out_b.astype(jnp.float32)),
                               np.asarray(ref_out), rtol=6e-2, atol=6e-2)
    np.testing.assert_allclose(np.asarray(pos_b.astype(jnp.float32)),
                               np.asarray(ref_pos), rtol=6e-2, atol=6e-2)
    assert bool(jnp.all(mask_b == ref_mask))

    print("KERNEL_OK")
</pallas_src>

<mosaic_0001>
module attributes {stable_mosaic.version = 11 : i64} {
  func.func @_fc_ln_kernel(%arg0: i32, %arg1: memref<16x64xf32, #tpu.memory_space<vmem>>, %arg2: memref<64x128xf32, #tpu.memory_space<vmem>>, %arg3: memref<4x128xf32, #tpu.memory_space<vmem>>, %arg4: memref<16x128xf32, #tpu.memory_space<vmem>>, %arg5: memref<16x1xf32, #tpu.memory_space<vmem>>) attributes {dimension_semantics = [#tpu.dimension_semantics<parallel>], iteration_bounds = array<i64: 2>, scalar_prefetch = 0 : i64, scratch_operands = 0 : i64, tpu.core_type = #tpu.core_type<tc>, window_params = [{transform_indices = @transform_0, window_bounds = array<i64: 16, 64>}, {pipeline_mode = #tpu.pipeline_mode<synchronous>, transform_indices = @transform_1, window_bounds = array<i64: 64, 128>}, {pipeline_mode = #tpu.pipeline_mode<synchronous>, transform_indices = @transform_2, window_bounds = array<i64: 4, 128>}, {transform_indices = @transform_3, window_bounds = array<i64: 16, 128>}, {transform_indices = @transform_4, window_bounds = array<i64: 16, 1>}]} {
    %c0 = arith.constant 0 : index
    %c0_0 = arith.constant 0 : index
    %0 = vector.load %arg1[%c0, %c0_0] : memref<16x64xf32, #tpu.memory_space<vmem>>, vector<16x64xf32>
    %cst = arith.constant dense<0.000000e+00> : vector<16xf32>
    %1 = vector.multi_reduction <add>, %0, %cst [1] : vector<16x64xf32> to vector<16xf32>
    %2 = vector.shape_cast %1 : vector<16xf32> to vector<16x1xf32>
    %c0_1 = arith.constant 0 : index
    %c0_2 = arith.constant 0 : index
    %3 = vector.load %arg5[%c0_1, %c0_2] : memref<16x1xf32, #tpu.memory_space<vmem>>, vector<16x1xf32>
    tpu.vector_store %arg5[%c0_1, %c0_2], %2 {strides = array<i32>} : memref<16x1xf32, #tpu.memory_space<vmem>>, vector<16x1xf32>,
    %c0_3 = arith.constant 0 : index
    %c0_4 = arith.constant 0 : index
    %4 = vector.load %arg3[%c0_3, %c0_4] : memref<4x128xf32, #tpu.memory_space<vmem>>, vector<4x128xf32>
    %c0_5 = arith.constant 0 : index
    %c0_6 = arith.constant 0 : index
    %5 = vector.load %arg2[%c0_5, %c0_6] : memref<64x128xf32, #tpu.memory_space<vmem>>, vector<64x128xf32>
    %cst_7 = arith.constant dense<0.000000e+00> : vector<16x128xf32>
    %6 = tpu.matmul %0, %5, %cst_7 {dimension_numbers = #tpu.dot_dimension_numbers<[1], [0], [0], [1], [0, 0, 1, 1], [], []>} : vector<16x64xf32>, vector<64x128xf32>, vector<16x128xf32> -> vector<16x128xf32>
    %7 = vector.extract_strided_slice %4 {offsets = [0, 0], sizes = [1, 128], strides = [1, 1]} : vector<4x128xf32> to vector<1x128xf32>
    %8 = vector.broadcast %7 : vector<1x128xf32> to vector<16x128xf32>
    %9 = arith.addf %6, %8 : vector<16x128xf32>
    %cst_8 = arith.constant 0.000000e+00 : f32
    %10 = vector.broadcast %cst_8 : f32 to vector<16x128xf32>
    %11 = arith.maximumf %9, %10 : vector<16x128xf32>
    %cst_9 = arith.constant dense<0.000000e+00> : vector<16xf32>
    %12 = vector.multi_reduction <add>, %11, %cst_9 [1] : vector<16x128xf32> to vector<16xf32>
    %13 = vector.shape_cast %12 : vector<16xf32> to vector<16x1xf32>
    %cst_10 = arith.constant 3.125000e-02 : f32
    %14 = vector.broadcast %cst_10 : f32 to vector<16x1xf32>
    %15 = arith.mulf %13, %14 : vector<16x1xf32>
    %16 = vector.broadcast %15 : vector<16x1xf32> to vector<16x128xf32>
    %17 = arith.subf %11, %16 : vector<16x128xf32>
    %18 = vector.extract_strided_slice %4 {offsets = [3, 0], sizes = [1, 128], strides = [1, 1]} : vector<4x128xf32> to vector<1x128xf32>
    %19 = vector.broadcast %18 : vector<1x128xf32> to vector<16x128xf32>
    %20 = arith.mulf %17, %19 : vector<16x128xf32>
    %21 = arith.mulf %20, %20 : vector<16x128xf32>
    %cst_11 = arith.constant dense<0.000000e+00> : vector<16xf32>
    %22 = vector.multi_reduction <add>, %21, %cst_11 [1] : vector<16x128xf32> to vector<16xf32>
    %23 = vector.shape_cast %22 : vector<16xf32> to vector<16x1xf32>
    %cst_12 = arith.constant 3.125000e-02 : f32
    %24 = vector.broadcast %cst_12 : f32 to vector<16x1xf32>
    %25 = arith.mulf %23, %24 : vector<16x1xf32>
    %cst_13 = arith.constant 9.99999974E-6 : f32
    %26 = vector.broadcast %cst_13 : f32 to vector<16x1xf32>
    %27 = arith.addf %25, %26 : vector<16x1xf32>
    %28 = math.rsqrt %27 : vector<16x1xf32>
    %29 = vector.broadcast %28 : vector<16x1xf32> to vector<16x128xf32>
    %30 = arith.mulf %20, %29 : vector<16x128xf32>
    %31 = vector.extract_strided_slice %4 {offsets = [1, 0], sizes = [1, 128], strides = [1, 1]} : vector<4x128xf32> to vector<1x128xf32>
    %32 = vector.broadcast %31 : vector<1x128xf32> to vector<16x128xf32>
    %33 = arith.mulf %30, %32 : vector<16x128xf32>
    %34 = vector.extract_strided_slice %4 {offsets = [2, 0], sizes = [1, 128], strides = [1, 1]} : vector<4x128xf32> to vector<1x128xf32>
    %35 = vector.broadcast %34 : vector<1x128xf32> to vector<16x128xf32>
    %36 = arith.addf %33, %35 : vector<16x128xf32>
    %c0_14 = arith.constant 0 : index
    %c0_15 = arith.constant 0 : index
    %37 = vector.load %arg4[%c0_14, %c0_15] : memref<16x128xf32, #tpu.memory_space<vmem>>, vector<16x128xf32>
    tpu.vector_store %arg4[%c0_14, %c0_15], %36 {strides = array<i32>} : memref<16x128xf32, #tpu.memory_space<vmem>>, vector<16x128xf32>,
    return
  }
  func.func @transform_0(%arg0: i32) -> (i32, i32) {
    %c0_i32 = arith.constant 0 : i32
    %c0_i32_0 = arith.constant 0 : i32
    return %arg0, %c0_i32 : i32, i32
  }
  func.func @transform_1(%arg0: i32) -> (i32, i32) {
    %c0_i32 = arith.constant 0 : i32
    %c0_i32_0 = arith.constant 0 : i32
    %c0_i32_1 = arith.constant 0 : i32
    return %c0_i32, %c0_i32_0 : i32, i32
  }
  func.func @transform_2(%arg0: i32) -> (i32, i32) {
    %c0_i32 = arith.constant 0 : i32
    %c0_i32_0 = arith.constant 0 : i32
    %c0_i32_1 = arith.constant 0 : i32
    return %c0_i32, %c0_i32_0 : i32, i32
  }
  func.func @transform_3(%arg0: i32) -> (i32, i32) {
    %c0_i32 = arith.constant 0 : i32
    %c0_i32_0 = arith.constant 0 : i32
    return %arg0, %c0_i32 : i32, i32
  }
  func.func @transform_4(%arg0: i32) -> (i32, i32) {
    %c0_i32 = arith.constant 0 : i32
    %c0_i32_0 = arith.constant 0 : i32
    return %arg0, %c0_i32 : i32, i32
  }
}

module attributes {stable_mosaic.version = 11 : i64} {
  func.func @_fc_ln_kernel(%arg0: i32, %arg1: memref<16x64xf32, #tpu.memory_space<vmem>>, %arg2: memref<64x128xf32, #tpu.memory_space<vmem>>, %arg3: memref<4x128xf32, #tpu.memory_space<vmem>>, %arg4: memref<16x128xf32, #tpu.memory_space<vmem>>, %arg5: memref<16x1xf32, #tpu.memory_space<vmem>>) attributes {dimension_semantics = [#tpu.dimension_semantics<parallel>], iteration_bounds = array<i64: 2>, scalar_prefetch = 0 : i64, scratch_operands = 0 : i64, tpu.core_type = #tpu.core_type<tc>, window_params = [{transform_indices = @transform_0, window_bounds = array<i64: 16, 64>}, {pipeline_mode = #tpu.pipeline_mode<synchronous>, transform_indices = @transform_1, window_bounds = array<i64: 64, 128>}, {pipeline_mode = #tpu.pipeline_mode<synchronous>, transform_indices = @transform_2, window_bounds = array<i64: 4, 128>}, {transform_indices = @transform_3, window_bounds = array<i64: 16, 128>}, {transform_indices = @transform_4, window_bounds = array<i64: 16, 1>}]} {
    %c0 = arith.constant 0 : index
    %c0_0 = arith.constant 0 : index
    %0 = vector.load %arg1[%c0, %c0_0] : memref<16x64xf32, #tpu.memory_space<vmem>>, vector<16x64xf32>
    %cst = arith.constant dense<0.000000e+00> : vector<16xf32>
    %1 = vector.multi_reduction <add>, %0, %cst [1] : vector<16x64xf32> to vector<16xf32>
    %2 = vector.shape_cast %1 : vector<16xf32> to vector<16x1xf32>
    %c0_1 = arith.constant 0 : index
    %c0_2 = arith.constant 0 : index
    %3 = vector.load %arg5[%c0_1, %c0_2] : memref<16x1xf32, #tpu.memory_space<vmem>>, vector<16x1xf32>
    tpu.vector_store %arg5[%c0_1, %c0_2], %2 {strides = array<i32>} : memref<16x1xf32, #tpu.memory_space<vmem>>, vector<16x1xf32>,
    %c0_3 = arith.constant 0 : index
    %c0_4 = arith.constant 0 : index
    %4 = vector.load %arg3[%c0_3, %c0_4] : memref<4x128xf32, #tpu.memory_space<vmem>>, vector<4x128xf32>
    %c0_5 = arith.constant 0 : index
    %c0_6 = arith.constant 0 : index
    %5 = vector.load %arg2[%c0_5, %c0_6] : memref<64x128xf32, #tpu.memory_space<vmem>>, vector<64x128xf32>
    %cst_7 = arith.constant dense<0.000000e+00> : vector<16x128xf32>
    %6 = tpu.matmul %0, %5, %cst_7 {dimension_numbers = #tpu.dot_dimension_numbers<[1], [0], [0], [1], [0, 0, 1, 1], [], []>} : vector<16x64xf32>, vector<64x128xf32>, vector<16x128xf32> -> vector<16x128xf32>
    %7 = vector.extract_strided_slice %4 {offsets = [0, 0], sizes = [1, 128], strides = [1, 1]} : vector<4x128xf32> to vector<1x128xf32>
    %8 = vector.broadcast %7 : vector<1x128xf32> to vector<16x128xf32>
    %9 = arith.addf %6, %8 : vector<16x128xf32>
    %cst_8 = arith.constant 0.000000e+00 : f32
    %10 = vector.broadcast %cst_8 : f32 to vector<16x128xf32>
    %11 = arith.maximumf %9, %10 : vector<16x128xf32>
    %cst_9 = arith.constant dense<0.000000e+00> : vector<16xf32>
    %12 = vector.multi_reduction <add>, %11, %cst_9 [1] : vector<16x128xf32> to vector<16xf32>
    %13 = vector.shape_cast %12 : vector<16xf32> to vector<16x1xf32>
    %cst_10 = arith.constant 3.125000e-02 : f32
    %14 = vector.broadcast %cst_10 : f32 to vector<16x1xf32>
    %15 = arith.mulf %13, %14 : vector<16x1xf32>
    %16 = vector.broadcast %15 : vector<16x1xf32> to vector<16x128xf32>
    %17 = arith.subf %11, %16 : vector<16x128xf32>
    %18 = vector.extract_strided_slice %4 {offsets = [3, 0], sizes = [1, 128], strides = [1, 1]} : vector<4x128xf32> to vector<1x128xf32>
    %19 = vector.broadcast %18 : vector<1x128xf32> to vector<16x128xf32>
    %20 = arith.mulf %17, %19 : vector<16x128xf32>
    %21 = arith.mulf %20, %20 : vector<16x128xf32>
    %cst_11 = arith.constant dense<0.000000e+00> : vector<16xf32>
    %22 = vector.multi_reduction <add>, %21, %cst_11 [1] : vector<16x128xf32> to vector<16xf32>
    %23 = vector.shape_cast %22 : vector<16xf32> to vector<16x1xf32>
    %cst_12 = arith.constant 3.125000e-02 : f32
    %24 = vector.broadcast %cst_12 : f32 to vector<16x1xf32>
    %25 = arith.mulf %23, %24 : vector<16x1xf32>
    %cst_13 = arith.constant 9.99999974E-6 : f32
    %26 = vector.broadcast %cst_13 : f32 to vector<16x1xf32>
    %27 = arith.addf %25, %26 : vector<16x1xf32>
    %28 = math.rsqrt %27 : vector<16x1xf32>
    %29 = vector.broadcast %28 : vector<16x1xf32> to vector<16x128xf32>
    %30 = arith.mulf %20, %29 : vector<16x128xf32>
    %31 = vector.extract_strided_slice %4 {offsets = [1, 0], sizes = [1, 128], strides = [1, 1]} : vector<4x128xf32> to vector<1x128xf32>
    %32 = vector.broadcast %31 : vector<1x128xf32> to vector<16x128xf32>
    %33 = arith.mulf %30, %32 : vector<16x128xf32>
    %34 = vector.extract_strided_slice %4 {offsets = [2, 0], sizes = [1, 128], strides = [1, 1]} : vector<4x128xf32> to vector<1x128xf32>
    %35 = vector.broadcast %34 : vector<1x128xf32> to vector<16x128xf32>
    %36 = arith.addf %33, %35 : vector<16x128xf32>
    %c0_14 = arith.constant 0 : index
    %c0_15 = arith.constant 0 : index
    %37 = vector.load %arg4[%c0_14, %c0_15] : memref<16x128xf32, #tpu.memory_space<vmem>>, vector<16x128xf32>
    tpu.vector_store %arg4[%c0_14, %c0_15], %36 {strides = array<i32>} : memref<16x128xf32, #tpu.memory_space<vmem>>, vector<16x128xf32>,
    return
  }
  func.func @transform_0(%arg0: i32) -> (i32, i32) {
    %c0_i32 = arith.constant 0 : i32
    %c0_i32_0 = arith.constant 0 : i32
    return %arg0, %c0_i32 : i32, i32
  }
  func.func @transform_1(%arg0: i32) -> (i32, i32) {
    %c0_i32 = arith.constant 0 : i32
    %c0_i32_0 = arith.constant 0 : i32
    %c0_i32_1 = arith.constant 0 : i32
    return %c0_i32, %c0_i32_0 : i32, i32
  }
  func.func @transform_2(%arg0: i32) -> (i32, i32) {
    %c0_i32 = arith.constant 0 : i32
    %c0_i32_0 = arith.constant 0 : i32
    %c0_i32_1 = arith.constant 0 : i32
    return %c0_i32, %c0_i32_0 : i32, i32
  }
  func.func @transform_3(%arg0: i32) -> (i32, i32) {
    %c0_i32 = arith.constant 0 : i32
    %c0_i32_0 = arith.constant 0 : i32
    return %arg0, %c0_i32 : i32, i32
  }
  func.func @transform_4(%arg0: i32) -> (i32, i32) {
    %c0_i32 = arith.constant 0 : i32
    %c0_i32_0 = arith.constant 0 : i32
    return %arg0, %c0_i32 : i32, i32
  }
}

</mosaic_0001>

<bundles_post_ra>
// kernel: tpu_custom_call.1
= control target key start
LH: loop header
LB: loop body
LE: loop exit
PB: predicated region body
PF: predicated region fallthrough
CT: control target
= control target key end

     0   :  { %10 = vsyncpa [#allocation3], 0  ;;  %s1044_s0 = inlined_call_operand.hbm [shape: f32[32,64], index: 0, kind: input, shape index: {}]   ;;  %s1045_s1 = inlined_call_operand.hbm [shape: f32[64,128], index: 1, kind: input, shape index: {}]   ;;  %s1046_s2 = inlined_call_operand.vmem [shape: f32[4,128], index: 2, kind: input, shape index: {}]   ;;  %s1047_s3 = inlined_call_operand.hbm [shape: f32[32,128], index: 3, kind: output, shape index: {0}]   ;;  %s1048_s4 = inlined_call_operand.vmem [shape: f32[32,1], index: 4, kind: output, shape index: {1}]  }
   0x1   :  { %12 = vsyncpa [#allocation3 + $0x1], 0 }
   0x2   :  { %13 = vsyncpa [#allocation6], 0 }
   0x3   :  { %14 = vsyncpa [#allocation4], 0 }
   0x4   :  { %16 = vsyncpa [#allocation4 + $0x1], 0  ;;  %s822_s15 = smov 0   ;;  %s824_s16 = smov 0  }
   0x5   :  { %s826_s17 = smov 0   ;;  %s828_s18 = smov 0  }
   0x6 LB: > { %s843_s19 = sadd.s32 4294967295, %s788_s18   ;;  %s528_s20 = sadd.s32 4294967294, %s788_s18   ;;  %s788_s18 = sphi %s828_s18, %s1068_s18   ;;  %s784_s17 = sphi %s826_s17, %s1067_s17   ;;  %s780_s16 = sphi %s824_s16, %s1066_s16   ;;  %s776_s15 = sphi %s822_s15, %s1065_s15  }
   0x7   : > { %p42_p0 = scmp.ne.s32.totalorder %s780_s16, %s776_s15  ;;  %p1049_p1 = scmp.eq.s32.totalorder %s843_s19, 0 }
   0x8   : > { %p114_p3 = scmp.eq.s32.totalorder %s528_s20, 1  ;;  %p529_p5 = scmp.ge.s32.totalorder %s788_s18, 1 }
   0x9   : > { %p852_p4 = por %p1049_p1, %p42_p0  ;;  %p147_p7 = scmp.lt.s32.totalorder %s788_s18, 3 }
   0xa   : > { %p857_p6 = por %p114_p3, %p42_p0  ;;  %s790_s24 = smov [#allocation5]  }
   0xb   : > { %s1052_s21 = scalar_select %p852_p4, 1, 0 }
   0xc   : > { %s1053_s22 = scalar_select %p857_p6, 1, 0 }
   0xd   : > { %p862_p8 = pnand %p529_p5, %p147_p7  ;;  %s159_s25 = sshll.u32 %s790_s24, 4  ;;  %s866_s25 = int_to_ptr.vmem [resolvable:$true] %s159_s25 }
   0xe   : > { %s878_s27 = sadd.s32 1, %s788_s18   ;;  %s29_s28 = sadd.s32 1, %s784_s17 }
   0xf   : > { %s1054_s23 = scalar_select %p862_p8, 1, 0 }
  0x10   : > { %p603_p9 = pneg %p862_p8  ;;  %s26_s29 = ssub.s32 %s788_s18, %s878_s27 }
  0x11   : > { %s660_s6 = scalar_lea.hbm %s1045_s1, 1024 }
  0x12   : > { %p873_p11 = pnand %p603_p9, %p1049_p1  ;;  %p661_p12 = scmp.ne.s32.totalorder %s1045_s1, %s660_s6 }
  0x13   : > { %p667_p5 = scmp.lt.u32.totalorder %s660_s6, %s1045_s1 }
  0x14   : > { %p662_p13 = pneg %p873_p11 }
  0x16   : > { %p663_p0 = pnand %p662_p13, %p661_p12 }
  0x18   : > { %p664_p3 = pneg %p663_p0 }
  0x1a   : > { %p669_p7 = pnand %p667_p5, %p664_p3 }
  0x1c   : > { %672 = shalt.err (!%p669_p7)
}
  0x1d   : > { %s673_s11 = scalar_lea.vmem %s866_s25, 1024  ;;  %p681_p2 = scmp.lt.s32.totalorder %s866_s25, %s866_s25 }
  0x1e   : > { %p674_p9 = scmp.ne.s32.totalorder %s866_s25, %s673_s11  ;;  %p682_p6 = scmp.lt.s32.totalorder %s673_s11, %s673_s11 }
  0x20   : > { %p676_p10 = pnand %p674_p9, %p662_p13  ;;  %p683_p4 = por %p682_p6, %p681_p2 }
  0x22   : > { %p677_p1 = pneg %p676_p10 }
  0x24   : > { %p684_p8 = pnand %p683_p4, %p677_p1 }
  0x26   : > { %687 = shalt.err (!%p684_p8)
}
  0x27   : > { %s791_s12 = smov 128   ;;  %s792_s13 = smov 8  }
  0x28   : > { %606 = dma.hbm_to_vmem [thread:$0]  (!%p873_p11), %s1045_s1, 1024, %s866_s25, [#allocation6], %s791_s12, %s791_s12, %s792_s13  }
  0x29   : > { %p27_p1 = scmp.eq.s32.totalorder %s26_s29, 0  ;;  %p36_p2 = scmp.ne.s32.totalorder %s784_s17, %s780_s16 }
  0x2a   : > { %p37_p4 = scmp.eq.s32.totalorder %s788_s18, 0  ;;  %p616_p6 = scmp.lt.s32.totalorder %s788_s18, 2 }
  0x2b   : > { %s912_s24 = scalar_select %p27_p1, %s784_s17, %s29_s28  }
  0x2c   : > { %p38_p8 = por %p37_p4, %p36_p2  ;;  %p1056_p10 = scmp.eq.s32.totalorder %s843_s19, 1 }
  0x2d   : > { %s176_s26 = sand.u32 1, %s784_s17   ;;  %s548_s5 = sshll.u32 %s788_s18, 8 }
  0x2e   : > { %p916_p12 = por %p1056_p10, %p36_p2  ;;  %s532_s6 = sshll.u32 %s176_s26, 4 }
  0x2f   : > { %s925_s9 = scalar_lea.hbm %s1044_s0, %s548_s5  ;;  %s180_s25 = scalar_lea.vmem [#allocation2], %s532_s6 }
  0x30   : > { %s187_s28 = sshll.u32 %s180_s25, 4  ;;  %p927_p11 = pnand %p616_p6, %p38_p8  ;;  %s931_s28 = int_to_ptr.vmem [resolvable:$true] %s187_s28 }
  0x31   : > { %s933_s10 = scalar_lea.sflag [#allocation3], %s176_s26  ;;  %s688_s11 = scalar_lea.hbm %s925_s9, 256 }
  0x32   : > { %p689_p13 = scmp.ne.s32.totalorder %s925_s9, %s688_s11  ;;  %p690_p0 = pneg %p927_p11 }
  0x33   : > { %s693_s5 = scalar_lea.hbm %s1044_s0, 512  ;;  %p694_p7 = scmp.lt.u32.totalorder %s925_s9, %s1044_s0 }
  0x34   : > { %p691_p3 = pnand %p690_p0, %p689_p13  ;;  %p695_p9 = scmp.lt.u32.totalorder %s693_s5, %s688_s11 }
  0x35   : > { %p697_p2 = scmp.lt.u32.totalorder %s688_s11, %s925_s9 }
  0x36   : > { %p692_p5 = pneg %p691_p3  ;;  %p696_p1 = por %p695_p9, %p694_p7 }
  0x38   : > { %p698_p4 = por %p697_p2, %p696_p1 }
  0x3a   : > { %p699_p6 = pnand %p698_p4, %p692_p5 }
  0x3c   : > { %702 = shalt.err (!%p699_p6)
}
  0x3d   : > { %s703_s26 = scalar_lea.vmem %s931_s28, 256  ;;  %s793_s8 = smov [#allocation2]  }
  0x3e   : > { %p704_p8 = scmp.ne.s32.totalorder %s931_s28, %s703_s26  ;;  %s708_s25 = sshll.u32 %s793_s8, 4  ;;  %s709_s25 = int_to_ptr.vmem [resolvable:$false] %s708_s25 }
  0x3f   : > { %s710_s14 = scalar_lea.vmem %s709_s25, 512  ;;  %p711_p3 = scmp.lt.s32.totalorder %s931_s28, %s709_s25 }
  0x40   : > { %p706_p10 = pnand %p704_p8, %p690_p0  ;;  %p712_p7 = scmp.lt.s32.totalorder %s710_s14, %s703_s26 }
  0x42   : > { %p707_p13 = pneg %p706_p10  ;;  %p713_p9 = por %p712_p7, %p711_p3 }
  0x44   : > { %p714_p1 = pnand %p713_p9, %p707_p13 }
  0x46   : > { %717 = shalt.err (!%p714_p1)
}
  0x47   : > { %610 = dma.hbm_to_vmem [thread:$0]  (!%p927_p11), %s925_s9, 256, %s931_s28, %s933_s10, %s791_s12, %s791_s12, %s792_s13  }
  0x48   : > { %p1059_p0 = scmp.ne.s32.totalorder %s1054_s23, 0 }
  0x49   : > { %s967_s11 = sand.u32 (!%p1059_p0), 1, %s780_s16   ;;  %p1060_p5 = scmp.ne.s32.totalorder (!%p1059_p0), %s1052_s21, 0 }
  0x4a   : > { %199 = sbr.rel (%p1059_p0) target bundleno = 653 (0x28d), region = 32  ;;  %s536_s20 = sshll.u32 (!%p1059_p0), %s967_s11, 4 }
  0x4b   : > { %s202_s5 = scalar_lea.sflag (!%p1059_p0), [#allocation3], %s967_s11  ;;  %s205_s29 = scalar_lea.vmem (!%p1059_p0), [#allocation2], %s536_s20 }
  0x51   : > { %763 = dma.done.wait (%p1060_p5), %s202_s5, 256  }
  0x52   : > { %765 = vsyncadd (%p1060_p5), %s202_s5, 4294967040  ;;  %p1061_p11 = scmp.eq.s32.totalorder %s843_s19, 0 }
  0x54   : > { %767 = dma.done.wait (%p1061_p11), [#allocation6], 1024   ;;  %p1062_p2 = pmov %p1061_p11 }
  0x55   : > { %v260_v0 = vld [vmem:[#allocation5] sm:$0xff]  ;;  %v261_v1 = vld [vmem:[#allocation5 + $0x8] sm:$0xff]  ;;  %v262_v2 = vld [vmem:[#allocation5 + $0x10] sm:$0xff]  ;;  %vm249_vm0 = vcmask 523264   ;;  %v268_v14 = vlaneseq  ;;  %s539_s12 = sshll.u32 %s843_s19, 1  ;;  %vm256_vm1 = vcmask 7168  }
  0x56   : > { %769 = vsyncadd (%p1062_p2), [#allocation6], 4294966272  ;;  %v579_v3 = vpack.c.bf16 %v261_v1, %v260_v0  ;;  %v263_v4 = vld [vmem:[#allocation5 + $0x18] sm:$0xff]  ;;  %v264_v6 = vld [vmem:[#allocation5 + $0x20] sm:$0xff]  ;;  %p242_p4 = scmp.lt.s32.totalorder %s539_s12, 3  ;;  %s549_s6 = sshll.u32 %s843_s19, 8 }
  0x57   : > { %v583_v5 = vpack.c.bf16 %v263_v4, %v262_v2  ;;  %v265_v7 = vld [vmem:[#allocation5 + $0x28] sm:$0xff]  ;;  %v247_v8 = vld [vmem:[%s205_s29] sm:$0xff]  ;;  %v267_v11 = vld [vmem:[#allocation5 + $0x38] sm:$0xff]  ;;  %v269_v15 = vshrl.u32 %v268_v14, 7  ;;  %s231_s7 = scalar_lea.vmem [#allocation7], %s536_s20  ;;  %s998_s14 = scalar_lea.hbm %s1047_s3, %s549_s6 }
  0x58   : > { %580 = vmatprep.subr.bf16.mxu0 %v579_v3  ;;  %576 = vmatprep.mubr.msk.f32.mxu0 %vm249_vm0, %v247_v8  ;;  %v587_v9 = vpack.c.bf16 %v265_v7, %v264_v6  ;;  %v266_v10 = vld [vmem:[#allocation5 + $0x30] sm:$0xff]  ;;  %v248_v13 = vld [vmem:[%s205_s29 + $0x8] sm:$0xff]  ;;  %v259_v17 = vld [vmem:[%s1046_s2] sm:$0xf]  ;;  %v250_v25 = vsel %vm249_vm0, %v247_v8, 0.0  ;;  %s1070_s12 = smov (!%p242_p4, %s539_s12), 3 }
  0x59   : > { %582 = vmatpush3.bf16.msra.mxu0 %v579_v3  ;;  %v591_v12 = vpack.c.bf16 %v267_v11, %v266_v10  ;;  %v270_v16 = vsub.s32 0, %v269_v15  ;;  %v365_v26 = vsub.s32 3, %v269_v15  ;;  %v253_v38 = vsel %vm249_vm0, %v248_v13, 0.0  ;;  %s540_s13 = sshll.u32 %s1070_s12, 3  ;;  %s416_s26 = sshll.u32 %s231_s7, 4  ;;  %s1000_s26 = int_to_ptr.vmem [resolvable:$true] %s416_s26 }
  0x5a   : > { %584 = vmatprep.subr.bf16.mxu0 %v583_v5  ;;  %s245_s10 = scalar_lea.vmem %s1048_s4, %s540_s13  ;;  %v385_v47 = vsub.s32 1, %v269_v15  ;;  %v391_v48 = vsub.s32 2, %v269_v15  ;;  %s398_s5 = scalar_lea.sflag [#allocation4], %s967_s11 }
  0x5b   : > { %v271_v18 = vrot.slane %v259_v17, %v270_v16  ;;  %v366_v29 = vrot.slane %v259_v17, %v365_v26  ;;  %s718_s29 = scalar_lea.vmem %s1000_s26, 256  ;;  %s794_s19 = smov [#allocation7]  }
  0x5c   : > { %v386_v49 = vrot.slane %v259_v17, %v385_v47  ;;  %v392_v51 = vrot.slane %v259_v17, %v391_v48  ;;  %p719_p6 = scmp.ne.s32.totalorder %s1000_s26, %s718_s29  ;;  %s722_s20 = sshll.u32 %s794_s19, 4  ;;  %s723_s20 = int_to_ptr.vmem [resolvable:$false] %s722_s20 }
  0x5d   : > { %586 = vmatpush3.bf16.msra.mxu0 %v583_v5  ;;  %s724_s21 = scalar_lea.vmem %s723_s20, 512  ;;  %p725_p13 = scmp.lt.s32.totalorder %s1000_s26, %s723_s20 }
  0x5e   : > { %588 = vmatprep.subr.bf16.mxu0 %v587_v9  ;;  %p720_p8 = pnand %p719_p6, %p916_p12  ;;  %p726_p3 = scmp.lt.s32.totalorder %s724_s21, %s718_s29 }
  0x60   : > { %p721_p10 = pneg %p720_p8  ;;  %p727_p7 = por %p726_p3, %p725_p13 }
  0x61   : > { %590 = vmatpush3.bf16.msra.mxu0 %v587_v9 }
  0x62   : > { %592 = vmatprep.subr.bf16.mxu0 %v591_v12  ;;  %p728_p9 = pnand %p727_p7, %p721_p10 }
  0x65   : > { %594 = vmatpush3.bf16.msra.mxu0 %v591_v12 }
  0x68   : > { %577 = vmatmul.mubr.msk.f32.vlgmr.msra.gmra.mrb[0].mxu0 %vm249_vm0, %v248_v13 }
 0x13b   : > { %v578_v19 = vpop.f32.mrb[0].mxu0 }
 0x13c   : > { %v344_v20 = vpop.f32.mrb[1].mxu0  ;;  %v350_v22 = vadd.f32 %v578_v19, %v271_v18 }
 0x13d   : > { %v345_v21 = vadd.f32 %v344_v20, %v271_v18 }
 0x13e   : > { %v354_v24 = vmax.f32 %v350_v22, 0.0 }
 0x13f   : > { %v353_v23 = vmax.f32 %v345_v21, 0.0 }
 0x141   : > { %355 = vadd.xlane.f32.xlu0 %v353_v23 }
 0x145   : > { %357 = vadd.xlane.f32.xlu0 %v354_v24 }
 0x149   : > { %251 = vadd.xlane.f32.xlu0 %v250_v25 }
 0x1ce   : > { %v356_v27 = vpop.xlane.xlu0 %355 }
 0x1cf   : > { %v359_v28 = vmul.f32 0.03125, %v356_v27 }
 0x1d1   : > { %v361_v30 = vsub.f32 %v353_v23, %v359_v28 }
 0x1d2   : > { %v358_v31 = vpop.xlane.xlu0 %357 }
 0x1d3   : > { %v360_v32 = vmul.f32 0.03125, %v358_v31  ;;  %v367_v33 = vmul.f32 %v366_v29, %v361_v30 }
 0x1d5   : > { %v362_v34 = vsub.f32 %v354_v24, %v360_v32  ;;  %v369_v35 = vmul.f32 %v367_v33, %v367_v33 }
 0x1d6   : > { %v252_v39 = vpop.xlane.xlu0 %251 }
 0x1d7   : > { %371 = vadd.xlane.f32.xlu1 %v369_v35  ;;  %v368_v36 = vmul.f32 %v366_v29, %v362_v34  ;;  %257 = vst.msk [vmem:[%s245_s10] sm:$0xff] %vm256_vm1, %v252_v39 }
 0x1d9   : > { %v370_v37 = vmul.f32 %v368_v36, %v368_v36 }
 0x1db   : > { %373 = vadd.xlane.f32.xlu1 %v370_v37 }
 0x1df   : > { %254 = vadd.xlane.f32.xlu1 %v253_v38 }
 0x264   : > { %v372_v40 = vpop.xlane.xlu1 %371 }
 0x265   : > { %v375_v41 = vmul.f32 0.03125, %v372_v40 }
 0x267   : > { %v377_v42 = vadd.f32 1e-05, %v375_v41 }
 0x268   : > { %v374_v43 = vpop.xlane.xlu1 %373 }
 0x269   : > { %656 = vrsqrt.f32 %v377_v42  ;;  %v376_v44 = vmul.f32 0.03125, %v374_v43 }
 0x26b   : > { %v378_v45 = vadd.f32 1e-05, %v376_v44 }
 0x26c   : > { %v255_v46 = vpop.xlane.xlu1 %254 }
 0x26d   : > { %658 = vrsqrt.f32 %v378_v45  ;;  %258 = vst.msk [vmem:[%s245_s10 + $0x8] sm:$0xff] %vm256_vm1, %v255_v46 }
 0x273   : > { %v657_v50 = vpop.eup %656 }
 0x274   : > { %v381_v52 = vmul.f32 %v657_v50, %v367_v33 }
 0x276   : > { %v387_v53 = vmul.f32 %v386_v49, %v381_v52 }
 0x277   : > { %v659_v54 = vpop.eup %658 }
 0x278   : > { %v393_v55 = vadd.f32 %v392_v51, %v387_v53  ;;  %v382_v56 = vmul.f32 %v659_v54, %v368_v36 }
 0x27a   : > { %v388_v57 = vmul.f32 %v386_v49, %v382_v56  ;;  %395 = vst [vmem:[%s231_s7] sm:$0xff] %v393_v55 }
 0x27c   : > { %v394_v58 = vadd.f32 %v392_v51, %v388_v57 }
 0x27e   : > { %396 = vst [vmem:[%s231_s7 + $0x8] sm:$0xff] %v394_v58 }
 0x27f   : > { %731 = shalt.err (!%p728_p9)
}
 0x280   : > { %s732_s23 = scalar_lea.hbm %s998_s14, 256  ;;  %s736_s9 = scalar_lea.hbm %s1047_s3, 512 }
 0x281   : > { %p733_p1 = scmp.ne.s32.totalorder %s998_s14, %s732_s23  ;;  %p737_p11 = scmp.lt.u32.totalorder %s998_s14, %s1047_s3 }
 0x282   : > { %p738_p2 = scmp.lt.u32.totalorder %s736_s9, %s732_s23  ;;  %p740_p6 = scmp.lt.u32.totalorder %s732_s23, %s998_s14 }
 0x283   : > { %p734_p0 = pnand %p733_p1, %p916_p12 }
 0x284   : > { %p739_p4 = por %p738_p2, %p737_p11 }
 0x285   : > { %p735_p5 = pneg %p734_p0 }
 0x286   : > { %p741_p8 = por %p740_p6, %p739_p4 }
 0x288   : > { %p742_p10 = pnand %p741_p8, %p735_p5 }
 0x28a   : > { %745 = shalt.err (!%p742_p10)
}
 0x28b   : > { %s795_s6 = smov 128   ;;  %s796_s7 = smov 8  }
 0x28c   : > { %601 = dma.vmem_to_hbm [thread:$0]  (%p916_p12), %s1000_s26, 256, %s998_s14, %s398_s5, %s795_s6, %s795_s6, %s796_s7  }
 0x28d PF: > { %s435_s8 = sand.u32 1, %s776_s15   ;;  %p1063_p13 = scmp.ne.s32.totalorder %s1053_s22, 0 }
 0x28e   : > { %p1064_p3 = scmp.ge.s32.totalorder %s788_s18, 2  ;;  %s436_s25 = scalar_lea.sflag [#allocation4], %s435_s8 }
 0x290   : > { %p612_p7 = pnand %p1064_p3, %p1063_p13 }
 0x292   : > { %771 = dma.done.wait (!%p612_p7), %s436_s25, 256  }
 0x293   : > { %773 = vsyncadd (!%p612_p7), %s436_s25, 4294967040  ;;  %p19_p9 = scmp.ge.s32.totalorder %s878_s27, 4   ;;  %s1065_s15 = smov %s780_s16 }
 0x294   : > { %s1066_s16 = smov %s784_s17  ;;  %s1067_s17 = smov %s912_s24 }
 0x295   : > { %s1068_s18 = smov %s878_s27  ;;  %21 = sbr.rel (!%p19_p9) target bundleno = 6 (0x6), region = 93 }
 0x29c   :  { %449 = vsyncpa [#allocation3], 1 }
 0x29d   :  { %451 = vsyncpa [#allocation3 + $0x1], 1 }
 0x29e   :  { %452 = vsyncpa [#allocation6], 1 }
 0x29f   :  { %453 = vsyncpa [#allocation4], 1 }
 0x2a0   :  { %455 = vsyncpa [#allocation4 + $0x1], 1 }

// kernel: tpu_custom_call.1
= control target key start
LH: loop header
LB: loop body
LE: loop exit
PB: predicated region body
PF: predicated region fallthrough
CT: control target
= control target key end

     0   :  { %10 = vsyncpa [#allocation3], 0  ;;  %s1044_s0 = inlined_call_operand.hbm [shape: f32[32,64], index: 0, kind: input, shape index: {}]   ;;  %s1045_s1 = inlined_call_operand.hbm [shape: f32[64,128], index: 1, kind: input, shape index: {}]   ;;  %s1046_s2 = inlined_call_operand.vmem [shape: f32[4,128], index: 2, kind: input, shape index: {}]   ;;  %s1047_s3 = inlined_call_operand.hbm [shape: f32[32,128], index: 3, kind: output, shape index: {0}]   ;;  %s1048_s4 = inlined_call_operand.vmem [shape: f32[32,1], index: 4, kind: output, shape index: {1}]  }
   0x1   :  { %12 = vsyncpa [#allocation3 + $0x1], 0 }
   0x2   :  { %13 = vsyncpa [#allocation6], 0 }
   0x3   :  { %14 = vsyncpa [#allocation4], 0 }
   0x4   :  { %16 = vsyncpa [#allocation4 + $0x1], 0  ;;  %s822_s15 = smov 0   ;;  %s824_s16 = smov 0  }
   0x5   :  { %s826_s17 = smov 0   ;;  %s828_s18 = smov 0  }
   0x6 LB: > { %s843_s19 = sadd.s32 4294967295, %s788_s18   ;;  %s528_s20 = sadd.s32 4294967294, %s788_s18   ;;  %s788_s18 = sphi %s828_s18, %s1068_s18   ;;  %s784_s17 = sphi %s826_s17, %s1067_s17   ;;  %s780_s16 = sphi %s824_s16, %s1066_s16   ;;  %s776_s15 = sphi %s822_s15, %s1065_s15  }
   0x7   : > { %p42_p0 = scmp.ne.s32.totalorder %s780_s16, %s776_s15  ;;  %p1049_p1 = scmp.eq.s32.totalorder %s843_s19, 0 }
   0x8   : > { %p114_p3 = scmp.eq.s32.totalorder %s528_s20, 1  ;;  %p529_p5 = scmp.ge.s32.totalorder %s788_s18, 1 }
   0x9   : > { %p852_p4 = por %p1049_p1, %p42_p0  ;;  %p147_p7 = scmp.lt.s32.totalorder %s788_s18, 3 }
   0xa   : > { %p857_p6 = por %p114_p3, %p42_p0  ;;  %s790_s24 = smov [#allocation5]  }
   0xb   : > { %s1052_s21 = scalar_select %p852_p4, 1, 0 }
   0xc   : > { %s1053_s22 = scalar_select %p857_p6, 1, 0 }
   0xd   : > { %p862_p8 = pnand %p529_p5, %p147_p7  ;;  %s159_s25 = sshll.u32 %s790_s24, 4  ;;  %s866_s25 = int_to_ptr.vmem [resolvable:$true] %s159_s25 }
   0xe   : > { %s878_s27 = sadd.s32 1, %s788_s18   ;;  %s29_s28 = sadd.s32 1, %s784_s17 }
   0xf   : > { %s1054_s23 = scalar_select %p862_p8, 1, 0 }
  0x10   : > { %p603_p9 = pneg %p862_p8  ;;  %s26_s29 = ssub.s32 %s788_s18, %s878_s27 }
  0x11   : > { %s660_s6 = scalar_lea.hbm %s1045_s1, 1024 }
  0x12   : > { %p873_p11 = pnand %p603_p9, %p1049_p1  ;;  %p661_p12 = scmp.ne.s32.totalorder %s1045_s1, %s660_s6 }
  0x13   : > { %p667_p5 = scmp.lt.u32.totalorder %s660_s6, %s1045_s1 }
  0x14   : > { %p662_p13 = pneg %p873_p11 }
  0x16   : > { %p663_p0 = pnand %p662_p13, %p661_p12 }
  0x18   : > { %p664_p3 = pneg %p663_p0 }
  0x1a   : > { %p669_p7 = pnand %p667_p5, %p664_p3 }
  0x1c   : > { %672 = shalt.err (!%p669_p7)
}
  0x1d   : > { %s673_s11 = scalar_lea.vmem %s866_s25, 1024  ;;  %p681_p2 = scmp.lt.s32.totalorder %s866_s25, %s866_s25 }
  0x1e   : > { %p674_p9 = scmp.ne.s32.totalorder %s866_s25, %s673_s11  ;;  %p682_p6 = scmp.lt.s32.totalorder %s673_s11, %s673_s11 }
  0x20   : > { %p676_p10 = pnand %p674_p9, %p662_p13  ;;  %p683_p4 = por %p682_p6, %p681_p2 }
  0x22   : > { %p677_p1 = pneg %p676_p10 }
  0x24   : > { %p684_p8 = pnand %p683_p4, %p677_p1 }
  0x26   : > { %687 = shalt.err (!%p684_p8)
}
  0x27   : > { %s791_s12 = smov 128   ;;  %s792_s13 = smov 8  }
  0x28   : > { %606 = dma.hbm_to_vmem [thread:$0]  (!%p873_p11), %s1045_s1, 1024, %s866_s25, [#allocation6], %s791_s12, %s791_s12, %s792_s13  }
  0x29   : > { %p27_p1 = scmp.eq.s32.totalorder %s26_s29, 0  ;;  %p36_p2 = scmp.ne.s32.totalorder %s784_s17, %s780_s16 }
  0x2a   : > { %p37_p4 = scmp.eq.s32.totalorder %s788_s18, 0  ;;  %p616_p6 = scmp.lt.s32.totalorder %s788_s18, 2 }
  0x2b   : > { %s912_s24 = scalar_select %p27_p1, %s784_s17, %s29_s28  }
  0x2c   : > { %p38_p8 = por %p37_p4, %p36_p2  ;;  %p1056_p10 = scmp.eq.s32.totalorder %s843_s19, 1 }
  0x2d   : > { %s176_s26 = sand.u32 1, %s784_s17   ;;  %s548_s5 = sshll.u32 %s788_s18, 8 }
  0x2e   : > { %p916_p12 = por %p1056_p10, %p36_p2  ;;  %s532_s6 = sshll.u32 %s176_s26, 4 }
  0x2f   : > { %s925_s9 = scalar_lea.hbm %s1044_s0, %s548_s5  ;;  %s180_s25 = scalar_lea.vmem [#allocation2], %s532_s6 }
  0x30   : > { %s187_s28 = sshll.u32 %s180_s25, 4  ;;  %p927_p11 = pnand %p616_p6, %p38_p8  ;;  %s931_s28 = int_to_ptr.vmem [resolvable:$true] %s187_s28 }
  0x31   : > { %s933_s10 = scalar_lea.sflag [#allocation3], %s176_s26  ;;  %s688_s11 = scalar_lea.hbm %s925_s9, 256 }
  0x32   : > { %p689_p13 = scmp.ne.s32.totalorder %s925_s9, %s688_s11  ;;  %p690_p0 = pneg %p927_p11 }
  0x33   : > { %s693_s5 = scalar_lea.hbm %s1044_s0, 512  ;;  %p694_p7 = scmp.lt.u32.totalorder %s925_s9, %s1044_s0 }
  0x34   : > { %p691_p3 = pnand %p690_p0, %p689_p13  ;;  %p695_p9 = scmp.lt.u32.totalorder %s693_s5, %s688_s11 }
  0x35   : > { %p697_p2 = scmp.lt.u32.totalorder %s688_s11, %s925_s9 }
  0x36   : > { %p692_p5 = pneg %p691_p3  ;;  %p696_p1 = por %p695_p9, %p694_p7 }
  0x38   : > { %p698_p4 = por %p697_p2, %p696_p1 }
  0x3a   : > { %p699_p6 = pnand %p698_p4, %p692_p5 }
  0x3c   : > { %702 = shalt.err (!%p699_p6)
}
  0x3d   : > { %s703_s26 = scalar_lea.vmem %s931_s28, 256  ;;  %s793_s8 = smov [#allocation2]  }
  0x3e   : > { %p704_p8 = scmp.ne.s32.totalorder %s931_s28, %s703_s26  ;;  %s708_s25 = sshll.u32 %s793_s8, 4  ;;  %s709_s25 = int_to_ptr.vmem [resolvable:$false] %s708_s25 }
  0x3f   : > { %s710_s14 = scalar_lea.vmem %s709_s25, 512  ;;  %p711_p3 = scmp.lt.s32.totalorder %s931_s28, %s709_s25 }
  0x40   : > { %p706_p10 = pnand %p704_p8, %p690_p0  ;;  %p712_p7 = scmp.lt.s32.totalorder %s710_s14, %s703_s26 }
  0x42   : > { %p707_p13 = pneg %p706_p10  ;;  %p713_p9 = por %p712_p7, %p711_p3 }
  0x44   : > { %p714_p1 = pnand %p713_p9, %p707_p13 }
  0x46   : > { %717 = shalt.err (!%p714_p1)
}
  0x47   : > { %610 = dma.hbm_to_vmem [thread:$0]  (!%p927_p11), %s925_s9, 256, %s931_s28, %s933_s10, %s791_s12, %s791_s12, %s792_s13  }
  0x48   : > { %p1059_p0 = scmp.ne.s32.totalorder %s1054_s23, 0 }
  0x49   : > { %s967_s11 = sand.u32 (!%p1059_p0), 1, %s780_s16   ;;  %p1060_p5 = scmp.ne.s32.totalorder (!%p1059_p0), %s1052_s21, 0 }
  0x4a   : > { %199 = sbr.rel (%p1059_p0) target bundleno = 653 (0x28d), region = 32  ;;  %s536_s20 = sshll.u32 (!%p1059_p0), %s967_s11, 4 }
  0x4b   : > { %s202_s5 = scalar_lea.sflag (!%p1059_p0), [#allocation3], %s967_s11  ;;  %s205_s29 = scalar_lea.vmem (!%p1059_p0), [#allocation2], %s536_s20 }
  0x51   : > { %763 = dma.done.wait (%p1060_p5), %s202_s5, 256  }
  0x52   : > { %765 = vsyncadd (%p1060_p5), %s202_s5, 4294967040  ;;  %p1061_p11 = scmp.eq.s32.totalorder %s843_s19, 0 }
  0x54   : > { %767 = dma.done.wait (%p1061_p11), [#allocation6], 1024   ;;  %p1062_p2 = pmov %p1061_p11 }
  0x55   : > { %v260_v0 = vld [vmem:[#allocation5] sm:$0xff]  ;;  %v261_v1 = vld [vmem:[#allocation5 + $0x8] sm:$0xff]  ;;  %v262_v2 = vld [vmem:[#allocation5 + $0x10] sm:$0xff]  ;;  %vm249_vm0 = vcmask 523264   ;;  %v268_v14 = vlaneseq  ;;  %s539_s12 = sshll.u32 %s843_s19, 1  ;;  %vm256_vm1 = vcmask 7168  }
  0x56   : > { %769 = vsyncadd (%p1062_p2), [#allocation6], 4294966272  ;;  %v579_v3 = vpack.c.bf16 %v261_v1, %v260_v0  ;;  %v263_v4 = vld [vmem:[#allocation5 + $0x18] sm:$0xff]  ;;  %v264_v6 = vld [vmem:[#allocation5 + $0x20] sm:$0xff]  ;;  %p242_p4 = scmp.lt.s32.totalorder %s539_s12, 3  ;;  %s549_s6 = sshll.u32 %s843_s19, 8 }
  0x57   : > { %v583_v5 = vpack.c.bf16 %v263_v4, %v262_v2  ;;  %v265_v7 = vld [vmem:[#allocation5 + $0x28] sm:$0xff]  ;;  %v247_v8 = vld [vmem:[%s205_s29] sm:$0xff]  ;;  %v267_v11 = vld [vmem:[#allocation5 + $0x38] sm:$0xff]  ;;  %v269_v15 = vshrl.u32 %v268_v14, 7  ;;  %s231_s7 = scalar_lea.vmem [#allocation7], %s536_s20  ;;  %s998_s14 = scalar_lea.hbm %s1047_s3, %s549_s6 }
  0x58   : > { %580 = vmatprep.subr.bf16.mxu0 %v579_v3  ;;  %576 = vmatprep.mubr.msk.f32.mxu0 %vm249_vm0, %v247_v8  ;;  %v587_v9 = vpack.c.bf16 %v265_v7, %v264_v6  ;;  %v266_v10 = vld [vmem:[#allocation5 + $0x30] sm:$0xff]  ;;  %v248_v13 = vld [vmem:[%s205_s29 + $0x8] sm:$0xff]  ;;  %v259_v17 = vld [vmem:[%s1046_s2] sm:$0xf]  ;;  %v250_v25 = vsel %vm249_vm0, %v247_v8, 0.0  ;;  %s1070_s12 = smov (!%p242_p4, %s539_s12), 3 }
  0x59   : > { %582 = vmatpush3.bf16.msra.mxu0 %v579_v3  ;;  %v591_v12 = vpack.c.bf16 %v267_v11, %v266_v10  ;;  %v270_v16 = vsub.s32 0, %v269_v15  ;;  %v365_v26 = vsub.s32 3, %v269_v15  ;;  %v253_v38 = vsel %vm249_vm0, %v248_v13, 0.0  ;;  %s540_s13 = sshll.u32 %s1070_s12, 3  ;;  %s416_s26 = sshll.u32 %s231_s7, 4  ;;  %s1000_s26 = int_to_ptr.vmem [resolvable:$true] %s416_s26 }
  0x5a   : > { %584 = vmatprep.subr.bf16.mxu0 %v583_v5  ;;  %s245_s10 = scalar_lea.vmem %s1048_s4, %s540_s13  ;;  %v385_v47 = vsub.s32 1, %v269_v15  ;;  %v391_v48 = vsub.s32 2, %v269_v15  ;;  %s398_s5 = scalar_lea.sflag [#allocation4], %s967_s11 }
  0x5b   : > { %v271_v18 = vrot.slane %v259_v17, %v270_v16  ;;  %v366_v29 = vrot.slane %v259_v17, %v365_v26  ;;  %s718_s29 = scalar_lea.vmem %s1000_s26, 256  ;;  %s794_s19 = smov [#allocation7]  }
  0x5c   : > { %v386_v49 = vrot.slane %v259_v17, %v385_v47  ;;  %v392_v51 = vrot.slane %v259_v17, %v391_v48  ;;  %p719_p6 = scmp.ne.s32.totalorder %s1000_s26, %s718_s29  ;;  %s722_s20 = sshll.u32 %s794_s19, 4  ;;  %s723_s20 = int_to_ptr.vmem [resolvable:$false] %s722_s20 }
  0x5d   : > { %586 = vmatpush3.bf16.msra.mxu0 %v583_v5  ;;  %s724_s21 = scalar_lea.vmem %s723_s20, 512  ;;  %p725_p13 = scmp.lt.s32.totalorder %s1000_s26, %s723_s20 }
  0x5e   : > { %588 = vmatprep.subr.bf16.mxu0 %v587_v9  ;;  %p720_p8 = pnand %p719_p6, %p916_p12  ;;  %p726_p3 = scmp.lt.s32.totalorder %s724_s21, %s718_s29 }
  0x60   : > { %p721_p10 = pneg %p720_p8  ;;  %p727_p7 = por %p726_p3, %p725_p13 }
  0x61   : > { %590 = vmatpush3.bf16.msra.mxu0 %v587_v9 }
  0x62   : > { %592 = vmatprep.subr.bf16.mxu0 %v591_v12  ;;  %p728_p9 = pnand %p727_p7, %p721_p10 }
  0x65   : > { %594 = vmatpush3.bf16.msra.mxu0 %v591_v12 }
  0x68   : > { %577 = vmatmul.mubr.msk.f32.vlgmr.msra.gmra.mrb[0].mxu0 %vm249_vm0, %v248_v13 }
 0x13b   : > { %v578_v19 = vpop.f32.mrb[0].mxu0 }
 0x13c   : > { %v344_v20 = vpop.f32.mrb[1].mxu0  ;;  %v350_v22 = vadd.f32 %v578_v19, %v271_v18 }
 0x13d   : > { %v345_v21 = vadd.f32 %v344_v20, %v271_v18 }
 0x13e   : > { %v354_v24 = vmax.f32 %v350_v22, 0.0 }
 0x13f   : > { %v353_v23 = vmax.f32 %v345_v21, 0.0 }
 0x141   : > { %355 = vadd.xlane.f32.xlu0 %v353_v23 }
 0x145   : > { %357 = vadd.xlane.f32.xlu0 %v354_v24 }
 0x149   : > { %251 = vadd.xlane.f32.xlu0 %v250_v25 }
 0x1ce   : > { %v356_v27 = vpop.xlane.xlu0 %355 }
 0x1cf   : > { %v359_v28 = vmul.f32 0.03125, %v356_v27 }
 0x1d1   : > { %v361_v30 = vsub.f32 %v353_v23, %v359_v28 }
 0x1d2   : > { %v358_v31 = vpop.xlane.xlu0 %357 }
 0x1d3   : > { %v360_v32 = vmul.f32 0.03125, %v358_v31  ;;  %v367_v33 = vmul.f32 %v366_v29, %v361_v30 }
 0x1d5   : > { %v362_v34 = vsub.f32 %v354_v24, %v360_v32  ;;  %v369_v35 = vmul.f32 %v367_v33, %v367_v33 }
 0x1d6   : > { %v252_v39 = vpop.xlane.xlu0 %251 }
 0x1d7   : > { %371 = vadd.xlane.f32.xlu1 %v369_v35  ;;  %v368_v36 = vmul.f32 %v366_v29, %v362_v34  ;;  %257 = vst.msk [vmem:[%s245_s10] sm:$0xff] %vm256_vm1, %v252_v39 }
 0x1d9   : > { %v370_v37 = vmul.f32 %v368_v36, %v368_v36 }
 0x1db   : > { %373 = vadd.xlane.f32.xlu1 %v370_v37 }
 0x1df   : > { %254 = vadd.xlane.f32.xlu1 %v253_v38 }
 0x264   : > { %v372_v40 = vpop.xlane.xlu1 %371 }
 0x265   : > { %v375_v41 = vmul.f32 0.03125, %v372_v40 }
 0x267   : > { %v377_v42 = vadd.f32 1e-05, %v375_v41 }
 0x268   : > { %v374_v43 = vpop.xlane.xlu1 %373 }
 0x269   : > { %656 = vrsqrt.f32 %v377_v42  ;;  %v376_v44 = vmul.f32 0.03125, %v374_v43 }
 0x26b   : > { %v378_v45 = vadd.f32 1e-05, %v376_v44 }
 0x26c   : > { %v255_v46 = vpop.xlane.xlu1 %254 }
 0x26d   : > { %658 = vrsqrt.f32 %v378_v45  ;;  %258 = vst.msk [vmem:[%s245_s10 + $0x8] sm:$0xff] %vm256_vm1, %v255_v46 }
 0x273   : > { %v657_v50 = vpop.eup %656 }
 0x274   : > { %v381_v52 = vmul.f32 %v657_v50, %v367_v33 }
 0x276   : > { %v387_v53 = vmul.f32 %v386_v49, %v381_v52 }
 0x277   : > { %v659_v54 = vpop.eup %658 }
 0x278   : > { %v393_v55 = vadd.f32 %v392_v51, %v387_v53  ;;  %v382_v56 = vmul.f32 %v659_v54, %v368_v36 }
 0x27a   : > { %v388_v57 = vmul.f32 %v386_v49, %v382_v56  ;;  %395 = vst [vmem:[%s231_s7] sm:$0xff] %v393_v55 }
 0x27c   : > { %v394_v58 = vadd.f32 %v392_v51, %v388_v57 }
 0x27e   : > { %396 = vst [vmem:[%s231_s7 + $0x8] sm:$0xff] %v394_v58 }
 0x27f   : > { %731 = shalt.err (!%p728_p9)
}
 0x280   : > { %s732_s23 = scalar_lea.hbm %s998_s14, 256  ;;  %s736_s9 = scalar_lea.hbm %s1047_s3, 512 }
 0x281   : > { %p733_p1 = scmp.ne.s32.totalorder %s998_s14, %s732_s23  ;;  %p737_p11 = scmp.lt.u32.totalorder %s998_s14, %s1047_s3 }
 0x282   : > { %p738_p2 = scmp.lt.u32.totalorder %s736_s9, %s732_s23  ;;  %p740_p6 = scmp.lt.u32.totalorder %s732_s23, %s998_s14 }
 0x283   : > { %p734_p0 = pnand %p733_p1, %p916_p12 }
 0x284   : > { %p739_p4 = por %p738_p2, %p737_p11 }
 0x285   : > { %p735_p5 = pneg %p734_p0 }
 0x286   : > { %p741_p8 = por %p740_p6, %p739_p4 }
 0x288   : > { %p742_p10 = pnand %p741_p8, %p735_p5 }
 0x28a   : > { %745 = shalt.err (!%p742_p10)
}
 0x28b   : > { %s795_s6 = smov 128   ;;  %s796_s7 = smov 8  }
 0x28c   : > { %601 = dma.vmem_to_hbm [thread:$0]  (%p916_p12), %s1000_s26, 256, %s998_s14, %s398_s5, %s795_s6, %s795_s6, %s796_s7  }
 0x28d PF: > { %s435_s8 = sand.u32 1, %s776_s15   ;;  %p1063_p13 = scmp.ne.s32.totalorder %s1053_s22, 0 }
 0x28e   : > { %p1064_p3 = scmp.ge.s32.totalorder %s788_s18, 2  ;;  %s436_s25 = scalar_lea.sflag [#allocation4], %s435_s8 }
 0x290   : > { %p612_p7 = pnand %p1064_p3, %p1063_p13 }
 0x292   : > { %771 = dma.done.wait (!%p612_p7), %s436_s25, 256  }
 0x293   : > { %773 = vsyncadd (!%p612_p7), %s436_s25, 4294967040  ;;  %p19_p9 = scmp.ge.s32.totalorder %s878_s27, 4   ;;  %s1065_s15 = smov %s780_s16 }
 0x294   : > { %s1066_s16 = smov %s784_s17  ;;  %s1067_s17 = smov %s912_s24 }
 0x295   : > { %s1068_s18 = smov %s878_s27  ;;  %21 = sbr.rel (!%p19_p9) target bundleno = 6 (0x6), region = 93 }
 0x29c   :  { %449 = vsyncpa [#allocation3], 1 }
 0x29d   :  { %451 = vsyncpa [#allocation3 + $0x1], 1 }
 0x29e   :  { %452 = vsyncpa [#allocation6], 1 }
 0x29f   :  { %453 = vsyncpa [#allocation4], 1 }
 0x2a0   :  { %455 = vsyncpa [#allocation4 + $0x1], 1 }

</bundles_post_ra>
